<compile_context>
chip_gen: v5e
topology: v5e:2x2
jax: 0.10.0
libtpu: 0.0.40
codegen_flags: <defaults>
</compile_context>

<pallas_src>
import functools
from types import SimpleNamespace

import jax
import jax.numpy as jnp
from jax.experimental import pallas as pl
from jax.experimental.pallas import tpu as pltpu


_NEUTRAL_LOGIT = -1.0e4  # BCE(x, 0) == 0 and sigmoid(x) == 0 exactly at x=-1e4


# ----------------------------------------------------------------------------
# shared numerics (plain-JAX helpers; kernel uses the fused formulation)
# ----------------------------------------------------------------------------
def _bce_with_logits(x, t):
    # numerically stable binary_cross_entropy_with_logits
    return jnp.maximum(x, 0.0) - x * t + jnp.log(1.0 + jnp.exp(-jnp.abs(x)))


def _round_up(x, m):
    return ((x + m - 1) // m) * m


def _vmem_capacity_bytes():
    try:
        info = pltpu.get_tpu_info()
        cap = getattr(info, "vmem_capacity_bytes", None)
        if cap:
            return int(cap)
    except Exception:
        pass
    return 64 << 20  # conservative (v7x-sized) fallback


# ----------------------------------------------------------------------------
# Pallas kernel: per-mask point statistics (mask BCE sums + dice partials)
# ----------------------------------------------------------------------------
def _point_stats_kernel(x_ref, t_ref, out_ref):
    """x_ref/t_ref: (bm, bp) bf16 point logits / labels.
    out_ref: (bm, 4) f32 per-row accumulator resident across the point axis:
      col 0 = sum_p BCE(logit, label)
      col 1 = sum_p sigmoid(logit) * label
      col 2 = sum_p sigmoid(logit)
      col 3 = sum_p label
    """
    j = pl.program_id(1)

    @pl.when(j == 0)
    def _():
        out_ref[...] = jnp.zeros_like(out_ref)

    x = x_ref[...].astype(jnp.float32)
    t = t_ref[...].astype(jnp.float32)

    # Shared transcendentals: one exp, one log, one approx reciprocal / elem.
    e = jnp.exp(-jnp.abs(x))                          # EUP
    r = pl.reciprocal(1.0 + e, approx=True)           # EUP vrcp (near free)
    prob = jnp.where(x >= 0.0, r, e * r)              # stable sigmoid(x)
    bce = jnp.maximum(x, 0.0) - x * t + jnp.log(1.0 + e)

    bm = x_ref.shape[0]
    bce_s = jnp.sum(bce, axis=-1, keepdims=True)       # (bm, 1)
    int_s = jnp.sum(prob * t, axis=-1, keepdims=True)
    p_s = jnp.sum(prob, axis=-1, keepdims=True)
    t_s = jnp.sum(t, axis=-1, keepdims=True)

    col = jax.lax.broadcasted_iota(jnp.int32, (bm, 4), 1)
    partial = (jnp.where(col == 0, bce_s, 0.0)
               + jnp.where(col == 1, int_s, 0.0)
               + jnp.where(col == 2, p_s, 0.0)
               + jnp.where(col == 3, t_s, 0.0))
    out_ref[...] += partial


def _choose_blocks(m_tot, p_pad):
    """Pick (bm, bp, vmem_limit) from the chip's VMEM capacity.

    m_tot is a multiple of 16, p_pad a multiple of 128 (guaranteed by caller),
    so the divisor searches below always terminate.
    """
    cap = _vmem_capacity_bytes()
    budget = (cap * 3) // 8                       # double-buffered input budget
    vmem_limit = min(cap, budget + (16 << 20))

    # mask-axis tile: <=128 rows, multiple of 16 (bf16 sublane packing),
    # divides m_tot, and leaves >=2 blocks when possible so v7x's second
    # TensorCore gets work on the "parallel" grid axis.
    bm = min(128, m_tot)
    if m_tot // bm < 2 and m_tot >= 32:
        bm = m_tot // 2
    bm = max(16, (bm // 16) * 16)
    while m_tot % bm != 0:
        bm -= 16

    # point-axis tile: lane-dense multiple of 128 dividing p_pad, sized so
    # 2 inputs x 2 pipeline buffers x bf16 fit the budget -> no tail mask.
    bp_cap = max(budget // (2 * 2 * 2 * bm), 128)
    bp = min(p_pad, (bp_cap // 128) * 128)
    while p_pad % bp != 0:
        bp -= 128
    return bm, bp, vmem_limit


@functools.partial(jax.jit, static_argnames=("bm", "bp", "vmem_limit"))
def _point_stats_pallas(point_logits, point_labels, *, bm, bp, vmem_limit):
    m_tot, p_pad = point_logits.shape
    grid = (m_tot // bm, p_pad // bp)
    return pl.pallas_call(
        _point_stats_kernel,
        out_shape=jax.ShapeDtypeStruct((m_tot, 4), jnp.float32),
        grid_spec=pltpu.PrefetchScalarGridSpec(
            num_scalar_prefetch=0,
            grid=grid,
            in_specs=[
                pl.BlockSpec((bm, bp), lambda i, j: (i, j)),
                pl.BlockSpec((bm, bp), lambda i, j: (i, j)),
            ],
            out_specs=pl.BlockSpec((bm, 4), lambda i, j: (i, 0)),
        ),
        compiler_params=pltpu.CompilerParams(
            dimension_semantics=("parallel", "arbitrary"),
            vmem_limit_bytes=vmem_limit,
        ),
    )(point_logits, point_labels)


def _point_stats_ref(point_logits, point_labels):
    """Pure-JAX reference for the kernel (same bf16-rounded inputs)."""
    x = point_logits.astype(jnp.float32)
    t = point_labels.astype(jnp.float32)
    prob = jax.nn.sigmoid(x)
    bce = _bce_with_logits(x, t)
    return jnp.stack([jnp.sum(bce, -1), jnp.sum(prob * t, -1),
                      jnp.sum(prob, -1), jnp.sum(t, -1)], axis=-1)


# ----------------------------------------------------------------------------
# Point sampling (PointRend-style) -- plain JAX (data-dependent gather)
# ----------------------------------------------------------------------------
def _point_sample(masks, coords):
    """Bilinear sample of (M, H, W) maps at (M, P, 2) xy coords in [0, 1].
    Matches F.grid_sample(align_corners=False, padding_mode='zeros')."""
    m, h, w = masks.shape
    fx = coords[..., 0] * w - 0.5
    fy = coords[..., 1] * h - 0.5
    x0 = jnp.floor(fx).astype(jnp.int32)
    y0 = jnp.floor(fy).astype(jnp.int32)
    wx = fx - x0.astype(jnp.float32)
    wy = fy - y0.astype(jnp.float32)

    def corner(yi, xi):
        valid = (yi >= 0) & (yi < h) & (xi >= 0) & (xi < w)
        yc = jnp.clip(yi, 0, h - 1)
        xc = jnp.clip(xi, 0, w - 1)
        vals = jax.vmap(lambda mm, yy, xx: mm[yy, xx])(masks, yc, xc)
        return jnp.where(valid, vals, 0.0)

    v00 = corner(y0, x0)
    v01 = corner(y0, x0 + 1)
    v10 = corner(y0 + 1, x0)
    v11 = corner(y0 + 1, x0 + 1)
    return (v00 * (1 - wy) * (1 - wx) + v01 * (1 - wy) * wx
            + v10 * wy * (1 - wx) + v11 * wy * wx)


def _get_uncertain_point_coords_with_randomness(key, coarse_logits, num_points,
                                                oversample_ratio,
                                                importance_sample_ratio):
    m = coarse_logits.shape[0]
    num_sampled = int(num_points * oversample_ratio)
    k1, k2 = jax.random.split(key)
    coords = jax.random.uniform(k1, (m, num_sampled, 2), dtype=jnp.float32)
    logits = _point_sample(coarse_logits, coords)
    uncertainty = -jnp.abs(logits)                    # calculate_uncertainty
    num_uncertain = int(importance_sample_ratio * num_points)
    num_random = num_points - num_uncertain
    idx = jax.lax.top_k(uncertainty, num_uncertain)[1]
    top_coords = jnp.take_along_axis(coords, idx[..., None], axis=1)
    if num_random > 0:
        rand_coords = jax.random.uniform(k2, (m, num_random, 2),
                                         dtype=jnp.float32)
        return jnp.concatenate([top_coords, rand_coords], axis=1)
    return top_coords


# ----------------------------------------------------------------------------
# Criterion + wrapper (port of FocalDiceLoss_bce_cls_emb)
# ----------------------------------------------------------------------------
class FocalDiceLossBceClsEmb:
    """JAX/Pallas port of FocalDiceLoss_bce_cls_emb (DirectMatcher +
    SetCriterion with losses ['bce_labels', 'masks'])."""
    # TODO(synk): DirectMatcher / SetCriterion internals are not part of the
    # provided snippet; they are reconstructed from the standard Mask2Former /
    # UniHCP implementation (query index == class label, weighted BCE labels,
    # point-sampled mask BCE + dice). Distributed num_masks averaging (ginfo
    # all-reduce) is omitted (single host).

    def __init__(self, cfg):
        self.cfg = cfg
        weight_dict = {"loss_bce": cfg.class_weight,
                       "loss_mask": cfg.mask_weight,
                       "loss_dice": cfg.dice_weight}
        if cfg.deep_supervision:
            aux = {}
            for i in range(cfg.dec_layers):
                aux.update({k + f"_{i}": v for k, v in weight_dict.items()})
            weight_dict.update(aux)
        self.weight_dict = weight_dict
        self.eos_coef = cfg.no_object_weight
        self.num_points = cfg.num_points
        self.oversample_ratio = cfg.oversample_ratio
        self.importance_sample_ratio = cfg.importance_sample_ratio

    # ------------- per-layer point sampling (plain JAX gather) -------------
    def _layer_point_data(self, layer, targets, key):
        pred_masks = layer["pred_masks"]                    # (B, Q, Hm, Wm)
        src, tgt = [], []
        for bi, t in enumerate(targets):
            labels = t["labels"]
            src.append(pred_masks[bi][labels])
            tgt.append(t["masks"].astype(jnp.float32))
        src_masks = jnp.concatenate(src, axis=0)            # (M, Hm, Wm)
        tgt_masks = jnp.concatenate(tgt, axis=0)            # (M, Ht, Wt)
        coords = _get_uncertain_point_coords_with_randomness(
            key, src_masks, self.num_points, self.oversample_ratio,
            self.importance_sample_ratio)
        return _point_sample(src_masks, coords), _point_sample(tgt_masks, coords)

    # -------------------- forward --------------------
    def __call__(self, outputs, targets, key, use_pallas=True):
        layers = [{"pred_logits": outputs["pred_logits"],
                   "pred_masks": outputs["pred_masks"]}]
        suffixes = [""]
        for i, aux in enumerate(outputs.get("aux_outputs", [])):
            layers.append(aux)
            suffixes.append(f"_{i}")

        pl0 = layers[0]["pred_logits"]
        b, q = (pl0.shape[:2] if pl0.ndim == 3 else pl0.shape)

        # ---- direct matching: query index == target class label ----
        tgt_cls = jnp.zeros((b, q), jnp.float32)
        w = jnp.full((b, q), self.eos_coef, jnp.float32)
        m = 0
        for bi, t in enumerate(targets):
            labels = t["labels"]
            tgt_cls = tgt_cls.at[bi, labels].set(1.0)
            w = w.at[bi, labels].set(1.0)
            m += int(labels.shape[0])
        num_masks = max(m, 1)

        losses = {}
        pts_x, pts_t = [], []
        # static row bound: the direct matcher yields at most B*Q masks
        m_max = _round_up(max(b * q, m, 16), 16)

        for li, (layer, sfx) in enumerate(zip(layers, suffixes)):
            logits = layer["pred_logits"]
            if logits.ndim == 3:
                logits = logits[..., 0]
            x = logits.astype(jnp.float32)
            # classification BCE: tiny, plain jnp (XLA fuses it for free)
            losses["loss_bce" + sfx] = jnp.sum(w * _bce_with_logits(x, tgt_cls)) / (b * q)

            if m == 0:
                continue
            px, pt = self._layer_point_data(layer, targets,
                                            jax.random.fold_in(key, li))
            # pad rows to static m_max with a neutral fill (zero contribution)
            px = jnp.pad(px, ((0, m_max - m), (0, 0)),
                         constant_values=_NEUTRAL_LOGIT)
            pt = jnp.pad(pt, ((0, m_max - m), (0, 0)))
            pts_x.append(px)
            pts_t.append(pt)

        if m == 0:
            zero = jnp.zeros((), jnp.float32)
            for sfx in suffixes:
                losses["loss_mask" + sfx] = zero
                losses["loss_dice" + sfx] = zero
        else:
            # one slab for ALL decoder layers -> one kernel launch
            X = jnp.concatenate(pts_x, axis=0)               # (L*m_max, P)
            T = jnp.concatenate(pts_t, axis=0)
            p = X.shape[1]
            p_pad = _round_up(p, 128)
            if p_pad != p:
                X = jnp.pad(X, ((0, 0), (0, p_pad - p)),
                            constant_values=_NEUTRAL_LOGIT)
                T = jnp.pad(T, ((0, 0), (0, p_pad - p)))
            # bf16 halves HBM traffic; the kernel upcasts to f32 internally
            Xb = X.astype(jnp.bfloat16)
            Tb = T.astype(jnp.bfloat16)

            if use_pallas:
                bm, bp, vmem_limit = _choose_blocks(Xb.shape[0], p_pad)
                stats = _point_stats_pallas(Xb, Tb, bm=bm, bp=bp,
                                            vmem_limit=vmem_limit)
            else:
                stats = _point_stats_ref(Xb, Tb)

            for li, sfx in enumerate(suffixes):
                s = stats[li * m_max: li * m_max + m]
                bce_s, inter_s = s[:, 0], s[:, 1]
                psum_s, tsum_s = s[:, 2], s[:, 3]
                losses["loss_mask" + sfx] = (
                    jnp.sum(bce_s / self.num_points) / num_masks)
                dice = 1.0 - (2.0 * inter_s + 1.0) / (psum_s + tsum_s + 1.0)
                losses["loss_dice" + sfx] = jnp.sum(dice) / num_masks

        # wrapper forward: scale by weight_dict, drop unweighted keys
        return {k: v * self.weight_dict[k]
                for k, v in losses.items() if k in self.weight_dict}


# ----------------------------------------------------------------------------
# demo / self-check
# ----------------------------------------------------------------------------
if __name__ == "__main__":
    cfg = SimpleNamespace(
        num_classes=8,
        num_points=1024,
        oversample_ratio=3.0,
        importance_sample_ratio=0.75,
        class_weight=2.0,
        mask_weight=5.0,
        dice_weight=5.0,
        no_object_weight=0.1,
        deep_supervision=True,
        dec_layers=1,
        ginfo=None,
    )

    B, Q, HM, WM = 2, cfg.num_classes, 16, 16
    HT, WT = 64, 64

    key = jax.random.PRNGKey(0)
    keys = jax.random.split(key, 8)

    pred_logits = jax.random.normal(keys[0], (B, Q, 1), dtype=jnp.float32)
    pred_masks = jax.random.normal(keys[1], (B, Q, HM, WM), dtype=jnp.float32)
    aux_logits = jax.random.normal(keys[2], (B, Q, 1), dtype=jnp.float32)
    aux_masks = jax.random.normal(keys[3], (B, Q, HM, WM), dtype=jnp.float32)

    def make_gt_masks(k, n):
        return (jax.random.uniform(k, (n, HT, WT)) > 0.5).astype(jnp.float32)

    targets = [
        {"labels": jnp.array([0, 3, 5], jnp.int32),
         "masks": make_gt_masks(keys[4], 3)},
        {"labels": jnp.array([1, 2], jnp.int32),
         "masks": make_gt_masks(keys[5], 2)},
    ]

    outputs = {
        "pred_logits": pred_logits,
        "pred_masks": pred_masks,
        "aux_outputs": [{"pred_logits": aux_logits, "pred_masks": aux_masks}],
    }

    loss_fn = FocalDiceLossBceClsEmb(cfg)
    sample_key = keys[6]

    losses = loss_fn(outputs, targets, sample_key, use_pallas=True)
    total = sum(losses.values())
    jax.block_until_ready(total)

    # pure-JAX reference on the same (bf16-rounded) point slab / same key
    ref_losses = loss_fn(outputs, targets, sample_key, use_pallas=False)
    for k in sorted(losses):
        assert jnp.allclose(losses[k], ref_losses[k], rtol=5e-3, atol=5e-3), (
            k, losses[k], ref_losses[k])

    print("KERNEL_OK")
</pallas_src>

<mosaic_0001>
module attributes {stable_mosaic.version = 11 : i64} {
  func.func @_point_stats_kernel(%arg0: i32, %arg1: i32, %arg2: memref<16x1024xbf16, #tpu.memory_space<vmem>>, %arg3: memref<16x1024xbf16, #tpu.memory_space<vmem>>, %arg4: memref<16x4xf32, #tpu.memory_space<vmem>>) attributes {dimension_semantics = [#tpu.dimension_semantics<parallel>, #tpu.dimension_semantics<arbitrary>], iteration_bounds = array<i64: 2, 1>, scalar_prefetch = 0 : i64, scratch_operands = 0 : i64, tpu.core_type = #tpu.core_type<tc>, window_params = [{transform_indices = @transform_0, window_bounds = array<i64: 16, 1024>}, {transform_indices = @transform_1, window_bounds = array<i64: 16, 1024>}, {transform_indices = @transform_2, window_bounds = array<i64: 16, 4>}]} {
    %c0_i32 = arith.constant 0 : i32
    %0 = arith.cmpi eq, %arg1, %c0_i32 : i32
    %1 = arith.extui %0 : i1 to i32
    %c0_i32_0 = arith.constant 0 : i32
    %2 = arith.cmpi ne, %1, %c0_i32_0 : i32
    scf.if %2 {
      %cst_21 = arith.constant 0.000000e+00 : f32
      %66 = vector.broadcast %cst_21 : f32 to vector<16x4xf32>
      %c0_22 = arith.constant 0 : index
      %c0_23 = arith.constant 0 : index
      %67 = vector.load %arg4[%c0_22, %c0_23] : memref<16x4xf32, #tpu.memory_space<vmem>>, vector<16x4xf32>
      tpu.vector_store %arg4[%c0_22, %c0_23], %66 {strides = array<i32>} : memref<16x4xf32, #tpu.memory_space<vmem>>, vector<16x4xf32>,
    } else {
    }
    %c0 = arith.constant 0 : index
    %c0_1 = arith.constant 0 : index
    %3 = vector.load %arg2[%c0, %c0_1] : memref<16x1024xbf16, #tpu.memory_space<vmem>>, vector<16x1024xbf16>
    %4 = arith.extf %3 : vector<16x1024xbf16> to vector<16x1024xf32>
    %c0_2 = arith.constant 0 : index
    %c0_3 = arith.constant 0 : index
    %5 = vector.load %arg3[%c0_2, %c0_3] : memref<16x1024xbf16, #tpu.memory_space<vmem>>, vector<16x1024xbf16>
    %6 = arith.extf %5 : vector<16x1024xbf16> to vector<16x1024xf32>
    %7 = math.absf %4 : vector<16x1024xf32>
    %cst = arith.constant 0.000000e+00 : f32
    %8 = vector.broadcast %cst : f32 to vector<16x1024xf32>
    %9 = arith.subf %8, %7 : vector<16x1024xf32>
    %10 = math.exp %9 : vector<16x1024xf32>
    %cst_4 = arith.constant 1.000000e+00 : f32
    %11 = vector.broadcast %cst_4 : f32 to vector<16x1024xf32>
    %12 = arith.addf %11, %10 : vector<16x1024xf32>
    %13 = tpu.reciprocal %12 {approx = true} : vector<16x1024xf32> -> vector<16x1024xf32>
    %cst_5 = arith.constant 0.000000e+00 : f32
    %14 = vector.broadcast %cst_5 : f32 to vector<16x1024xf32>
    %15 = arith.cmpf oge, %4, %14 : vector<16x1024xf32>
    %16 = arith.mulf %10, %13 : vector<16x1024xf32>
    %17 = arith.select %15, %13, %16 : vector<16x1024xi1>, vector<16x1024xf32>
    %cst_6 = arith.constant 0.000000e+00 : f32
    %18 = vector.broadcast %cst_6 : f32 to vector<16x1024xf32>
    %19 = arith.maximumf %4, %18 : vector<16x1024xf32>
    %20 = arith.mulf %4, %6 : vector<16x1024xf32>
    %21 = arith.subf %19, %20 : vector<16x1024xf32>
    %cst_7 = arith.constant 1.000000e+00 : f32
    %22 = vector.broadcast %cst_7 : f32 to vector<16x1024xf32>
    %23 = arith.addf %22, %10 : vector<16x1024xf32>
    %24 = math.log %23 : vector<16x1024xf32>
    %25 = arith.addf %21, %24 : vector<16x1024xf32>
    %cst_8 = arith.constant dense<0.000000e+00> : vector<16xf32>
    %26 = vector.multi_reduction <add>, %25, %cst_8 [1] : vector<16x1024xf32> to vector<16xf32>
    %27 = vector.shape_cast %26 : vector<16xf32> to vector<16x1xf32>
    %28 = arith.mulf %17, %6 : vector<16x1024xf32>
    %cst_9 = arith.constant dense<0.000000e+00> : vector<16xf32>
    %29 = vector.multi_reduction <add>, %28, %cst_9 [1] : vector<16x1024xf32> to vector<16xf32>
    %30 = vector.shape_cast %29 : vector<16xf32> to vector<16x1xf32>
    %cst_10 = arith.constant dense<0.000000e+00> : vector<16xf32>
    %31 = vector.multi_reduction <add>, %17, %cst_10 [1] : vector<16x1024xf32> to vector<16xf32>
    %32 = vector.shape_cast %31 : vector<16xf32> to vector<16x1xf32>
    %cst_11 = arith.constant dense<0.000000e+00> : vector<16xf32>
    %33 = vector.multi_reduction <add>, %6, %cst_11 [1] : vector<16x1024xf32> to vector<16xf32>
    %34 = vector.shape_cast %33 : vector<16xf32> to vector<16x1xf32>
    %35 = tpu.iota {dimensions = array<i32: 1>} : vector<16x4xi32>
    %c0_i32_12 = arith.constant 0 : i32
    %36 = vector.broadcast %c0_i32_12 : i32 to vector<16x4xi32>
    %37 = arith.cmpi eq, %35, %36 : vector<16x4xi32>
    %cst_13 = arith.constant 0.000000e+00 : f32
    %38 = vector.shape_cast %27 : vector<16x1xf32> to vector<16x1xf32>
    %39 = vector.broadcast %38 : vector<16x1xf32> to vector<16x4xf32>
    %40 = vector.broadcast %cst_13 : f32 to vector<16x4xf32>
    %41 = arith.select %37, %39, %40 : vector<16x4xi1>, vector<16x4xf32>
    %c1_i32 = arith.constant 1 : i32
    %42 = vector.broadcast %c1_i32 : i32 to vector<16x4xi32>
    %43 = arith.cmpi eq, %35, %42 : vector<16x4xi32>
    %cst_14 = arith.constant 0.000000e+00 : f32
    %44 = vector.shape_cast %30 : vector<16x1xf32> to vector<16x1xf32>
    %45 = vector.broadcast %44 : vector<16x1xf32> to vector<16x4xf32>
    %46 = vector.broadcast %cst_14 : f32 to vector<16x4xf32>
    %47 = arith.select %43, %45, %46 : vector<16x4xi1>, vector<16x4xf32>
    %48 = arith.addf %41, %47 : vector<16x4xf32>
    %c2_i32 = arith.constant 2 : i32
    %49 = vector.broadcast %c2_i32 : i32 to vector<16x4xi32>
    %50 = arith.cmpi eq, %35, %49 : vector<16x4xi32>
    %cst_15 = arith.constant 0.000000e+00 : f32
    %51 = vector.shape_cast %32 : vector<16x1xf32> to vector<16x1xf32>
    %52 = vector.broadcast %51 : vector<16x1xf32> to vector<16x4xf32>
    %53 = vector.broadcast %cst_15 : f32 to vector<16x4xf32>
    %54 = arith.select %50, %52, %53 : vector<16x4xi1>, vector<16x4xf32>
    %55 = arith.addf %48, %54 : vector<16x4xf32>
    %c3_i32 = arith.constant 3 : i32
    %56 = vector.broadcast %c3_i32 : i32 to vector<16x4xi32>
    %57 = arith.cmpi eq, %35, %56 : vector<16x4xi32>
    %cst_16 = arith.constant 0.000000e+00 : f32
    %58 = vector.shape_cast %34 : vector<16x1xf32> to vector<16x1xf32>
    %59 = vector.broadcast %58 : vector<16x1xf32> to vector<16x4xf32>
    %60 = vector.broadcast %cst_16 : f32 to vector<16x4xf32>
    %61 = arith.select %57, %59, %60 : vector<16x4xi1>, vector<16x4xf32>
    %62 = arith.addf %55, %61 : vector<16x4xf32>
    %c0_17 = arith.constant 0 : index
    %c0_18 = arith.constant 0 : index
    %63 = vector.load %arg4[%c0_17, %c0_18] : memref<16x4xf32, #tpu.memory_space<vmem>>, vector<16x4xf32>
    %64 = arith.addf %63, %62 : vector<16x4xf32>
    %c0_19 = arith.constant 0 : index
    %c0_20 = arith.constant 0 : index
    %65 = vector.load %arg4[%c0_19, %c0_20] : memref<16x4xf32, #tpu.memory_space<vmem>>, vector<16x4xf32>
    tpu.vector_store %arg4[%c0_19, %c0_20], %64 {strides = array<i32>} : memref<16x4xf32, #tpu.memory_space<vmem>>, vector<16x4xf32>,
    return
  }
  func.func @transform_0(%arg0: i32, %arg1: i32) -> (i32, i32) {
    %c0_i32 = arith.constant 0 : i32
    return %arg0, %arg1 : i32, i32
  }
  func.func @transform_1(%arg0: i32, %arg1: i32) -> (i32, i32) {
    %c0_i32 = arith.constant 0 : i32
    return %arg0, %arg1 : i32, i32
  }
  func.func @transform_2(%arg0: i32, %arg1: i32) -> (i32, i32) {
    %c0_i32 = arith.constant 0 : i32
    %c0_i32_0 = arith.constant 0 : i32
    return %arg0, %c0_i32 : i32, i32
  }
}

</mosaic_0001>

<bundles_post_ra>
// kernel: _point_stats_pallas.1
= control target key start
LH: loop header
LB: loop body
LE: loop exit
PB: predicated region body
PF: predicated region fallthrough
CT: control target
= control target key end

     0   :  { %7 = vsyncpa [#allocation3], 0  ;;  %s1566_s0 = inlined_call_operand.hbm [shape: bf16[32,1024], index: 0, kind: input, shape index: {}]   ;;  %s1567_s1 = inlined_call_operand.hbm [shape: bf16[32,1024], index: 1, kind: input, shape index: {}]   ;;  %s1568_s2 = inlined_call_operand.vmem [shape: f32[32,4], index: 2, kind: output, shape index: {}]  }
   0x1   :  { %9 = vsyncpa [#allocation3 + $0x1], 0 }
   0x2   :  { %10 = vsyncpa [#allocation5], 0 }
   0x3   :  { %12 = vsyncpa [#allocation5 + $0x1], 0  ;;  %s1066_s9 = smov 0   ;;  %s1068_s10 = smov 0  }
   0x4   :  { %s1070_s11 = smov 0   ;;  %s1072_s12 = smov 0  }
   0x5   :  { %s1074_s13 = smov 0   ;;  %s1076_s14 = smov 0  }
   0x6 LB: > { %s750_s15 = sadd.s32 4294967295, %s1046_s14   ;;  %s30_s16 = sadd.s32 1, %s1042_s13  ;;  %s1046_s14 = sphi %s1076_s14, %s18_s14   ;;  %s1042_s13 = sphi %s1074_s13, %s1680_s13   ;;  %s1038_s12 = sphi %s1072_s12, %s1679_s12   ;;  %s1034_s11 = sphi %s1070_s11, %s1678_s11   ;;  %s1030_s10 = sphi %s1068_s10, %s1677_s10   ;;  %s1026_s9 = sphi %s1066_s9, %s1676_s9  }
   0x7   : > { %p32_p0 = scmp.ge.s32.totalorder %s30_s16, 2  ;;  %s39_s17 = sadd.s32 1, %s1034_s11 }
   0x8   : > { %p46_p1 = scmp.ne.s32.totalorder %s1034_s11, %s1030_s10  ;;  %p47_p2 = scmp.eq.s32.totalorder %s1046_s14, 0 }
   0x9   : > { %s1682_s16 = smov (%p32_p0, %s30_s16), 0  ;;  %p52_p4 = scmp.ne.s32.totalorder %s1030_s10, %s1026_s9 }
   0xa   : > { %p1102_p3 = por %p47_p2, %p46_p1  ;;  %s34_s19 = ssub.s32 %s1042_s13, %s1682_s16 }
   0xb   : > { %p53_p5 = scmp.eq.s32.totalorder %s750_s15, 0  ;;  %p37_p6 = scmp.eq.s32.totalorder %s34_s19, 0 }
   0xc   : > { %p784_p8 = scmp.lt.s32.totalorder %s1046_s14, 2  ;;  %s1118_s22 = sand.u32 1, %s1034_s11  }
   0xd   : > { %p1109_p7 = por %p53_p5, %p52_p4  ;;  %s770_s23 = sshll.u32 %s1042_s13, 6 }
   0xe   : > { %s1115_s21 = scalar_select %p37_p6, %s1034_s11, %s39_s17  }
   0xf   : > { %s754_s24 = sshll.u32 %s1118_s22, 6  ;;  %s142_s27 = scalar_lea.hbm %s1566_s0, %s770_s23 }
  0x10   : > { %s143_s28 = sshll.u32 %s142_s27, 4  ;;  %s134_s29 = scalar_lea.vmem [#allocation2], %s754_s24  ;;  %s144_s28 = int_to_ptr.hbm [resolvable:$true] %s143_s28 }
  0x11   : > { %s145_s30 = sshll.u32 %s134_s29, 4  ;;  %p1127_p9 = pnand %p784_p8, %p1102_p3  ;;  %s146_s30 = int_to_ptr.vmem [resolvable:$true] %s145_s30 }
  0x12   : > { %p762_p10 = scmp.ge.s32.totalorder %s1046_s14, 1  ;;  %p178_p11 = scmp.lt.s32.totalorder %s1046_s14, 3 }
  0x13   : > { %s131_s4 = scalar_lea.sflag [#allocation3], %s1118_s22  ;;  %s1048_s5 = smov 512  }
  0x14   : > { %s1049_s6 = smov 32   ;;  %p179_p12 = pnand %p762_p10, %p178_p11 }
  0x15   : > { %780 = dma.hbm_to_vmem [thread:$0]  (!%p1127_p9), %s144_s28, 1024, %s146_s30, %s131_s4, %s1048_s5, %s1048_s5, %s1049_s6  }
  0x16   : > { %s167_s9 = scalar_lea.hbm %s1567_s1, %s770_s23  ;;  %s159_s17 = scalar_lea.vmem [#allocation4], %s754_s24 }
  0x17   : > { %s168_s15 = sshll.u32 %s167_s9, 4  ;;  %s170_s18 = sshll.u32 %s159_s17, 4  ;;  %s169_s15 = int_to_ptr.hbm [resolvable:$true] %s168_s15  ;;  %s171_s18 = int_to_ptr.vmem [resolvable:$true] %s170_s18 }
  0x18   : > { %s156_s19 = scalar_lea.sflag [#allocation5], %s1118_s22  ;;  %182 = sbr.rel (%p179_p12) target bundleno = 255 (0xff), region = 28 }
  0x19   : > { %783 = dma.hbm_to_vmem [thread:$0]  (!%p1127_p9), %s169_s15, 1024, %s171_s18, %s156_s19, %s1048_s5, %s1048_s5, %s1049_s6  }
  0x1d   : > { %s184_s25 = sand.u32 1, %s1030_s10  }
  0x1e   : > { %s763_s26 = sshll.u32 %s184_s25, 6  ;;  %s185_s27 = scalar_lea.sflag [#allocation3], %s184_s25 }
  0x1f   : > { %s1143_s28 = scalar_lea.vmem [#allocation2], %s763_s26 }
  0x20   : > { %1017 = dma.done.wait (%p1109_p7), %s185_s27, 1024  }
  0x21   : > { %1019 = vsyncadd (%p1109_p7), %s185_s27, 4294966272  ;;  %s195_s23 = scalar_lea.sflag [#allocation5], %s184_s25  ;;  %s1149_s24 = scalar_lea.vmem [#allocation4], %s763_s26 }
  0x22   : > { %1021 = dma.done.wait (%p1109_p7), %s195_s23, 1024  }
  0x23   : > { %1023 = vsyncadd (%p1109_p7), %s195_s23, 4294966272  ;;  %v246_v0 = vld [vmem:[%s1143_s28 + $0x20] sm:$0xff]  ;;  %v247_v1 = vld [vmem:[%s1143_s28 + $0x28] sm:$0xff]  ;;  %s765_s20 = sshll.u32 %s1038_s12, 1 }
  0x24   : > { %v248_v2 = vld [vmem:[%s1143_s28 + $0x30] sm:$0xff]  ;;  %v249_v3 = vld [vmem:[%s1143_s28 + $0x38] sm:$0xff]  ;;  %v1159_v4 = vunpack.c.l.bf16 %v246_v0  ;;  %v1161_v5 = vunpack.c.h.bf16 %v246_v0  ;;  %v1163_v6 = vunpack.c.l.bf16 %v247_v1  ;;  %v270_v7 = vld [vmem:[%s1149_s24 + $0x20] sm:$0xff]  ;;  %v1166_v8 = vunpack.c.h.bf16 %v247_v1  ;;  %p230_p13 = scmp.lt.s32.totalorder %s765_s20, 3 }
  0x25   : > { %v1168_v9 = vunpack.c.l.bf16 %v248_v2  ;;  %v1170_v10 = vunpack.c.h.bf16 %v248_v2  ;;  %v1172_v11 = vunpack.c.l.bf16 %v249_v3  ;;  %v1174_v12 = vunpack.c.h.bf16 %v249_v3  ;;  %v271_v13 = vld [vmem:[%s1149_s24 + $0x28] sm:$0xff]  ;;  %v272_v15 = vld [vmem:[%s1149_s24 + $0x30] sm:$0xff]  ;;  %v273_v28 = vld [vmem:[%s1149_s24 + $0x38] sm:$0xff] }
  0x26   : > { %1616 = vst [vmem:[#allocation8_spill] sm:$0xff] %v1166_v8  ;;  %v1177_v14 = vunpack.c.l.bf16 %v270_v7  ;;  %v1180_v16 = vunpack.c.h.bf16 %v270_v7  ;;  %v298_v17 = vand.u32 2147483647, %v1159_v4  ;;  %v299_v18 = vand.u32 2147483647, %v1161_v5  ;;  %s1684_s20 = smov (!%p230_p13, %s765_s20), 3 }
  0x27   : > { %1617 = vst [vmem:[#allocation9_spill] sm:$0xff] %v1168_v9  ;;  %v300_v19 = vand.u32 2147483647, %v1163_v6  ;;  %v1185_v20 = vunpack.c.l.bf16 %v271_v13  ;;  %v301_v21 = vand.u32 2147483647, %v1166_v8  ;;  %v1193_v33 = vunpack.c.h.bf16 %v271_v13  ;;  %s766_s22 = sshll.u32 %s1684_s20, 3 }
  0x28   : > { %1618 = vst [vmem:[#allocation10_spill] sm:$0xff] %v1170_v10  ;;  %v302_v22 = vand.u32 2147483647, %v1168_v9  ;;  %v303_v23 = vand.u32 2147483647, %v1170_v10  ;;  %v314_v26 = vsub.f32 0.0, %v298_v17  ;;  %v1195_v37 = vunpack.c.l.bf16 %v272_v15  ;;  %s1536_s3 = scalar_lea.vmem %s1568_s2, %s766_s22 }
  0x29   : > { %1619 = vst [vmem:[#allocation11_spill] sm:$0xff] %v1172_v11  ;;  %v304_v24 = vand.u32 2147483647, %v1172_v11  ;;  %v305_v25 = vand.u32 2147483647, %v1174_v12  ;;  %v315_v27 = vsub.f32 0.0, %v299_v18  ;;  %v1197_v41 = vunpack.c.h.bf16 %v272_v15 }
  0x2a   : > { %1620 = vst [vmem:[#allocation12_spill] sm:$0xff] %v1174_v12  ;;  %v316_v29 = vsub.f32 0.0, %v300_v19  ;;  %v317_v30 = vsub.f32 0.0, %v301_v21  ;;  %v318_v31 = vsub.f32 0.0, %v302_v22  ;;  %v319_v32 = vsub.f32 0.0, %v303_v23  ;;  %v242_v18 = vld [vmem:[%s1143_s28] sm:$0xff] }
  0x2b   : > { %1621 = vst [vmem:[#allocation13_spill] sm:$0xff] %v1177_v14  ;;  %v320_v34 = vsub.f32 0.0, %v304_v24  ;;  %v338_v35 = vmul.f32 1.442695, %v314_v26  ;;  %v340_v36 = vmul.f32 1.442695, %v315_v27  ;;  %v1199_v42 = vunpack.c.l.bf16 %v273_v28 }
  0x2c   : > { %1622 = vst [vmem:[#allocation14_spill] sm:$0xff] %v1180_v16  ;;  %v321_v38 = vsub.f32 0.0, %v305_v25  ;;  %v342_v39 = vmul.f32 1.442695, %v316_v29  ;;  %v344_v40 = vmul.f32 1.442695, %v317_v30  ;;  %v1201_v44 = vunpack.c.h.bf16 %v273_v28 }
  0x2d   : > { %1623 = vst [vmem:[#allocation15_spill] sm:$0xff] %v1185_v20  ;;  %836 = vpow2.f32 %v338_v35  ;;  %v346_v43 = vmul.f32 1.442695, %v318_v31  ;;  %v348_v45 = vmul.f32 1.442695, %v319_v32  ;;  %v458_v46 = vmul.f32 %v1177_v14, %v1159_v4  ;;  %v243_v24 = vld [vmem:[%s1143_s28 + $0x8] sm:$0xff] }
  0x2e   : > { %1624 = vst [vmem:[#allocation16_spill] sm:$0xff] %v1193_v33  ;;  %838 = vpow2.f32 %v340_v36  ;;  %v350_v47 = vmul.f32 1.442695, %v320_v34  ;;  %v459_v48 = vmul.f32 %v1180_v16, %v1161_v5  ;;  %v460_v49 = vmul.f32 %v1185_v20, %v1163_v6  ;;  %v244_v29 = vld [vmem:[%s1143_s28 + $0x10] sm:$0xff]  ;;  %v245_v32 = vld [vmem:[%s1143_s28 + $0x18] sm:$0xff] }
  0x2f   : > { %1625 = vst [vmem:[#allocation17_spill] sm:$0xff] %v1195_v37  ;;  %840 = vpow2.f32 %v342_v39  ;;  %v352_v50 = vmul.f32 1.442695, %v321_v38  ;;  %v442_v51 = vmax.f32 %v1159_v4, 0.0  ;;  %v443_v52 = vmax.f32 %v1161_v5, 0.0 }
  0x30   : > { %1626 = vst [vmem:[#allocation18_spill] sm:$0xff] %v1197_v41  ;;  %842 = vpow2.f32 %v344_v40  ;;  %v444_v53 = vmax.f32 %v1163_v6, 0.0  ;;  %v445_v54 = vmax.f32 %v1166_v8, 0.0  ;;  %v446_v55 = vmax.f32 %v1168_v9, 0.0 }
  0x31   : > { %1627 = vst [vmem:[#allocation19_spill] sm:$0xff] %v1199_v42  ;;  %844 = vpow2.f32 %v346_v43  ;;  %v447_v56 = vmax.f32 %v1170_v10, 0.0  ;;  %v461_v57 = vmul.f32 %v1193_v33, %v1166_v8  ;;  %v462_v58 = vmul.f32 %v1195_v37, %v1168_v9  ;;  %v266_v43 = vld [vmem:[%s1149_s24] sm:$0xff] }
  0x32   : > { %1628 = vst [vmem:[#allocation20_spill] sm:$0xff] %v1201_v44  ;;  %846 = vpow2.f32 %v348_v45  ;;  %v448_v60 = vmax.f32 %v1172_v11, 0.0  ;;  %v463_v61 = vmul.f32 %v1197_v41, %v1170_v10  ;;  %v464_v62 = vmul.f32 %v1199_v42, %v1172_v11  ;;  %v268_v42 = vld [vmem:[%s1149_s24 + $0x10] sm:$0xff] }
  0x33   : > { %v1219_v59 = vpop.eup %836  ;;  %848 = vpow2.f32 %v350_v47  ;;  %v449_v1 = vmax.f32 %v1174_v12, 0.0  ;;  %v465_v2 = vmul.f32 %v1201_v44, %v1174_v12  ;;  %v1237_v13 = vsub.f32 %v442_v51, %v458_v46 }
  0x34   : > { %v1226_v63 = vpop.eup %838  ;;  %850 = vpow2.f32 %v352_v50  ;;  %v1229_v0 = vadd.f32 1.0, %v1219_v59  ;;  %v1239_v15 = vsub.f32 %v443_v52, %v459_v48  ;;  %v1241_v17 = vsub.f32 %v444_v53, %v460_v49 }
  0x35   : > { %1629 = vst [vmem:[#allocation21_spill] sm:$0xff] %v1226_v63  ;;  %v1234_v3 = vpop.eup %840  ;;  %v363_v7 = vadd.f32 1.0, %v1226_v63  ;;  %v1247_v22 = vsub.f32 %v445_v54, %v461_v57  ;;  %v1249_v23 = vsub.f32 %v446_v55, %v462_v58  ;;  %v1256_v27 = vsub.f32 %v447_v56, %v463_v61  ;;  %v267_v54 = vld [vmem:[%s1149_s24 + $0x8] sm:$0xff] }
  0x36   : > { %1630 = vst [vmem:[#allocation22_spill] sm:$0xff] %v1234_v3  ;;  %v1244_v19 = vpop.eup %842  ;;  %v364_v21 = vadd.f32 1.0, %v1234_v3  ;;  %852 = vlog2.f32 %v1229_v0  ;;  %v1258_v28 = vsub.f32 %v448_v60, %v464_v62  ;;  %v1265_v34 = vunpack.c.l.bf16 %v242_v18 }
  0x37   : > { %1631 = vst [vmem:[#allocation23_spill] sm:$0xff] %v1244_v19  ;;  %v1253_v25 = vpop.eup %844  ;;  %v365_v26 = vadd.f32 1.0, %v1244_v19  ;;  %854 = vrcp.f32 %v363_v7  ;;  %v1267_v35 = vunpack.c.h.bf16 %v242_v18  ;;  %v1272_v39 = vunpack.c.l.bf16 %v243_v24 }
  0x38   : > { %1632 = vst [vmem:[#allocation24_spill] sm:$0xff] %v1253_v25  ;;  %v1261_v30 = vpop.eup %846  ;;  %v366_v31 = vadd.f32 1.0, %v1253_v25  ;;  %856 = vrcp.f32 %v364_v21  ;;  %v1274_v40 = vunpack.c.h.bf16 %v243_v24  ;;  %v1280_v47 = vunpack.c.l.bf16 %v244_v29 }
  0x39   : > { %1633 = vst [vmem:[#allocation25_spill] sm:$0xff] %v1261_v30  ;;  %v1269_v36 = vpop.eup %848  ;;  %v367_v38 = vadd.f32 1.0, %v1261_v30  ;;  %858 = vrcp.f32 %v365_v26  ;;  %v1282_v48 = vunpack.c.h.bf16 %v244_v29  ;;  %v1285_v50 = vunpack.c.l.bf16 %v245_v32 }
  0x3a   : > { %1634 = vst [vmem:[#allocation26_spill] sm:$0xff] %v1269_v36  ;;  %v1277_v45 = vpop.eup %850  ;;  %v368_v46 = vadd.f32 1.0, %v1269_v36  ;;  %860 = vrcp.f32 %v366_v31  ;;  %v1287_v51 = vunpack.c.h.bf16 %v245_v32  ;;  %v1289_v53 = vsub.f32 %v449_v1, %v465_v2 }
  0x3b   : > { %1635 = vst [vmem:[#allocation27_spill] sm:$0xff] %v1277_v45  ;;  %v369_v49 = vadd.f32 1.0, %v1277_v45  ;;  %862 = vrcp.f32 %v367_v38  ;;  %v1292_v55 = vunpack.c.l.bf16 %v266_v43  ;;  %v290_v56 = vand.u32 2147483647, %v1265_v34 }
  0x3c   : > { %v853_v52 = vpop.eup %852  ;;  %864 = vrcp.f32 %v368_v46  ;;  %v1297_v58 = vunpack.c.h.bf16 %v266_v43  ;;  %v291_v60 = vand.u32 2147483647, %v1267_v35  ;;  %v292_v61 = vand.u32 2147483647, %v1272_v39 }
  0x3d   : > { %1636 = vst [vmem:[#allocation28_spill] sm:$0xff] %v1292_v55  ;;  %v1295_v57 = vpop.eup %854  ;;  %866 = vrcp.f32 %v369_v49  ;;  %v293_v1 = vand.u32 2147483647, %v1274_v40  ;;  %v294_v2 = vand.u32 2147483647, %v1280_v47  ;;  %v1308_v29 = vunpack.c.l.bf16 %v267_v54 }
  0x3e   : > { %1637 = vst [vmem:[#allocation29_spill] sm:$0xff] %v1295_v57  ;;  %v1301_v62 = vpop.eup %856  ;;  %868 = vlog2.f32 %v363_v7  ;;  %v295_v18 = vand.u32 2147483647, %v1282_v48  ;;  %v296_v32 = vand.u32 2147483647, %v1285_v50  ;;  %v306_v7 = vsub.f32 0.0, %v290_v56 }
  0x3f   : > { %1638 = vst [vmem:[#allocation30_spill] sm:$0xff] %v1301_v62  ;;  %v1306_v24 = vpop.eup %858  ;;  %870 = vlog2.f32 %v364_v21  ;;  %v297_v43 = vand.u32 2147483647, %v1287_v51  ;;  %v307_v41 = vsub.f32 0.0, %v291_v60  ;;  %v308_v37 = vsub.f32 0.0, %v292_v61 }
  0x40   : > { %1639 = vst [vmem:[#allocation31_spill] sm:$0xff] %v1306_v24  ;;  %v1312_v44 = vpop.eup %860  ;;  %872 = vlog2.f32 %v365_v26  ;;  %v499_v45 = vmul.f32 0.6931472, %v853_v52  ;;  %v1317_v36 = vunpack.c.h.bf16 %v267_v54  ;;  %v309_v21 = vsub.f32 0.0, %v293_v1 }
  0x41   : > { %1640 = vst [vmem:[#allocation32_spill] sm:$0xff] %v1312_v44  ;;  %v1315_v33 = vpop.eup %862  ;;  %874 = vlog2.f32 %v366_v31  ;;  %v310_v12 = vsub.f32 0.0, %v294_v2  ;;  %v311_v16 = vsub.f32 0.0, %v295_v18  ;;  %v322_v14 = vmul.f32 1.442695, %v306_v7 }
  0x42   : > { %1641 = vst [vmem:[#allocation33_spill] sm:$0xff] %v1315_v33  ;;  %v1319_v20 = vpop.eup %864  ;;  %876 = vlog2.f32 %v367_v38  ;;  %v1323_v26 = vunpack.c.l.bf16 %v268_v42  ;;  %v312_v56 = vsub.f32 0.0, %v296_v32  ;;  %v324_v60 = vmul.f32 1.442695, %v307_v41 }
  0x43   : > { %1642 = vst [vmem:[#allocation34_spill] sm:$0xff] %v1319_v20  ;;  %v1321_v30 = vpop.eup %866  ;;  %878 = vlog2.f32 %v368_v46  ;;  %v1325_v52 = vunpack.c.h.bf16 %v268_v42  ;;  %v313_v31 = vsub.f32 0.0, %v297_v43  ;;  %v326_v54 = vmul.f32 1.442695, %v308_v37 }
  0x44   : > { %1643 = vst [vmem:[#allocation35_spill] sm:$0xff] %v1321_v30  ;;  %v869_v61 = vpop.eup %868  ;;  %880 = vlog2.f32 %v369_v49  ;;  %v522_v38 = vadd.f32 %v499_v45, %v1237_v13  ;;  %v328_v2 = vmul.f32 1.442695, %v309_v21  ;;  %v330_v7 = vmul.f32 1.442695, %v310_v12  ;;  %v269_v49 = vld [vmem:[%s1149_s24 + $0x18] sm:$0xff] }
  0x45   : > { %v871_v1 = vpop.eup %870  ;;  %v501_v20 = vmul.f32 0.6931472, %v869_v61  ;;  %882 = vrcp.f32 %v1229_v0  ;;  %v332_v32 = vmul.f32 1.442695, %v311_v16  ;;  %v334_v43 = vmul.f32 1.442695, %v312_v56 }
  0x46   : > { %v873_v18 = vpop.eup %872  ;;  %v503_v46 = vmul.f32 0.6931472, %v871_v1  ;;  %884 = vpow2.f32 %v322_v14  ;;  %v336_v13 = vmul.f32 1.442695, %v313_v31  ;;  %v1333_v1 = vunpack.c.l.bf16 %v269_v49 }
  0x47   : > { %v875_v41 = vpop.eup %874  ;;  %v505_v30 = vmul.f32 0.6931472, %v873_v18  ;;  %v523_v42 = vadd.f32 %v501_v20, %v1239_v15  ;;  %886 = vpow2.f32 %v324_v60  ;;  %v1335_v20 = vunpack.c.h.bf16 %v269_v49 }
  0x48   : > { %v877_v37 = vpop.eup %876  ;;  %v507_v33 = vmul.f32 0.6931472, %v875_v41  ;;  %v524_v61 = vadd.f32 %v503_v46, %v1241_v17  ;;  %888 = vpow2.f32 %v326_v54  ;;  %v434_v60 = vmax.f32 %v1265_v34, 0.0 }
  0x49   : > { %v879_v0 = vpop.eup %878  ;;  %v509_v45 = vmul.f32 0.6931472, %v877_v37  ;;  %v525_v21 = vadd.f32 %v505_v30, %v1247_v22  ;;  %v539_v14 = vadd.f32 %v523_v42, %v522_v38  ;;  %890 = vpow2.f32 %v328_v2  ;;  %1644 = vst [vmem:[#allocation36_spill] sm:$0xff] %v1335_v20 }
  0x4a   : > { %v881_v12 = vpop.eup %880  ;;  %v511_v16 = vmul.f32 0.6931472, %v879_v0  ;;  %892 = vpow2.f32 %v330_v7  ;;  %v526_v56 = vadd.f32 %v507_v33, %v1249_v23  ;;  %v435_v30 = vmax.f32 %v1267_v35, 0.0 }
  0x4b   : > { %v1337_v15 = vpop.eup %882  ;;  %v540_v17 = vadd.f32 %v539_v14, %v524_v61  ;;  %894 = vpow2.f32 %v332_v32  ;;  %v513_v22 = vmul.f32 0.6931472, %v881_v12  ;;  %v436_v54 = vmax.f32 %v1272_v39, 0.0 }
  0x4c   : > { %1645 = vst [vmem:[#allocation37_spill] sm:$0xff] %v1337_v15  ;;  %v1341_v31 = vpop.eup %884  ;;  %896 = vpow2.f32 %v334_v43  ;;  %v527_v2 = vadd.f32 %v509_v45, %v1256_v27  ;;  %v437_v33 = vmax.f32 %v1274_v40, 0.0  ;;  %v528_v46 = vadd.f32 %v511_v16, %v1258_v28 }
  0x4d   : > { %v1345_v38 = vpop.eup %886  ;;  %v541_v18 = vadd.f32 %v540_v17, %v525_v21  ;;  %898 = vpow2.f32 %v336_v13  ;;  %v438_v32 = vmax.f32 %v1280_v47, 0.0  ;;  %v439_v41 = vmax.f32 %v1282_v48, 0.0 }
  0x4e   : > { %v1349_v23 = vpop.eup %888  ;;  %v355_v7 = vadd.f32 1.0, %v1345_v38  ;;  %v440_v27 = vmax.f32 %v1285_v50, 0.0  ;;  %v441_v37 = vmax.f32 %v1287_v51, 0.0  ;;  %v529_v13 = vadd.f32 %v513_v22, %v1289_v53 }
  0x4f   : > { %v1355_v42 = vpop.eup %890  ;;  %v542_v49 = vadd.f32 %v541_v18, %v526_v56  ;;  %v356_v43 = vadd.f32 1.0, %v1349_v23  ;;  %v1362_v28 = vadd.f32 1.0, %v1341_v31  ;;  %v450_v12 = vmul.f32 %v1292_v55, %v1265_v34 }
  0x50   : > { %v893_v61 = vpop.eup %892  ;;  %v357_v0 = vadd.f32 1.0, %v1355_v42  ;;  %900 = vrcp.f32 %v355_v7  ;;  %v451_v17 = vmul.f32 %v1297_v58, %v1267_v35  ;;  %v452_v53 = vmul.f32 %v1308_v29, %v1272_v39 }
  0x51   : > { %v895_v45 = vpop.eup %894  ;;  %v543_v21 = vadd.f32 %v542_v49, %v527_v2  ;;  %v358_v14 = vadd.f32 1.0, %v893_v61  ;;  %902 = vrcp.f32 %v356_v43  ;;  %v453_v2 = vmul.f32 %v1317_v36, %v1274_v40 }
  0x52   : > { %v897_v16 = vpop.eup %896  ;;  %v359_v56 = vadd.f32 1.0, %v895_v45  ;;  %904 = vrcp.f32 %v357_v0  ;;  %v454_v55 = vmul.f32 %v1323_v26, %v1280_v47  ;;  %v455_v44 = vmul.f32 %v1325_v52, %v1282_v48 }
  0x53   : > { %v899_v22 = vpop.eup %898  ;;  %v544_v18 = vadd.f32 %v543_v21, %v528_v46  ;;  %v360_v11 = vadd.f32 1.0, %v897_v16  ;;  %906 = vrcp.f32 %v358_v14  ;;  %v456_v10 = vmul.f32 %v1333_v1, %v1285_v50 }
  0x54   : > { %v361_v49 = vadd.f32 1.0, %v899_v22  ;;  %908 = vrcp.f32 %v359_v56  ;;  %v457_v46 = vmul.f32 %v1335_v20, %v1287_v51  ;;  %v466_v8 = vsub.f32 %v434_v60, %v450_v12 }
  0x55   : > { %v545_v25 = vadd.f32 %v544_v18, %v529_v13  ;;  %910 = vrcp.f32 %v360_v11  ;;  %v467_v24 = vsub.f32 %v435_v30, %v451_v17  ;;  %v468_v62 = vsub.f32 %v436_v54, %v452_v53 }
  0x56   : > { %v901_v21 = vpop.eup %900  ;;  %912 = vrcp.f32 %v361_v49  ;;  %v469_v3 = vsub.f32 %v437_v33, %v453_v2  ;;  %v1382_v57 = vsub.f32 %v438_v32, %v454_v55  ;;  %v1384_v18 = vsub.f32 %v439_v41, %v455_v44 }
  0x57   : > { %v903_v9 = vpop.eup %902  ;;  %546 = vadd.xlane.f32.xlu1 %v545_v25  ;;  %914 = vlog2.f32 %v1362_v28  ;;  %v1386_v63 = vsub.f32 %v440_v27, %v456_v10  ;;  %v1388_v20 = vsub.f32 %v441_v37, %v457_v46  ;;  %vm387_vm0 = vcmp.ge.f32.partialorder %v1267_v35, 0.0 }
  0x58   : > { %v905_v19 = vpop.eup %904  ;;  %916 = vlog2.f32 %v355_v7  ;;  %vm388_vm1 = vcmp.ge.f32.partialorder %v1272_v39, 0.0  ;;  %v403_v25 = vmul.f32 %v901_v21, %v1345_v38  ;;  %vm389_vm2 = vcmp.ge.f32.partialorder %v1274_v40, 0.0 }
  0x59   : > { %v907_v13 = vpop.eup %906  ;;  %918 = vlog2.f32 %v356_v43  ;;  %vm390_vm3 = vcmp.ge.f32.partialorder %v1280_v47, 0.0  ;;  %v404_v10 = vmul.f32 %v903_v9, %v1349_v23  ;;  %vm391_vm4 = vcmp.ge.f32.partialorder %v1282_v48, 0.0 }
  0x5a   : > { %v909_v15 = vpop.eup %908  ;;  %920 = vlog2.f32 %v357_v0  ;;  %v405_v55 = vmul.f32 %v905_v19, %v1355_v42  ;;  %v406_v30 = vmul.f32 %v907_v13, %v893_v61  ;;  %vm386_vm5 = vcmp.ge.f32.partialorder %v1265_v34, 0.0 }
  0x5b   : > { %v911_v60 = vpop.eup %910  ;;  %922 = vlog2.f32 %v358_v14  ;;  %vm392_vm6 = vcmp.ge.f32.partialorder %v1285_v50, 0.0  ;;  %vm393_vm7 = vcmp.ge.f32.partialorder %v1287_v51, 0.0  ;;  %v407_v38 = vmul.f32 %v909_v15, %v895_v45 }
  0x5c   : > { %v913_v44 = vpop.eup %912  ;;  %924 = vlog2.f32 %v359_v56  ;;  %v408_v23 = vmul.f32 %v911_v60, %v897_v16  ;;  %v419_v32 = vsel %vm387_vm0, %v901_v21, %v403_v25  ;;  %vm394_vm8 = vcmp.ge.f32.partialorder %v1159_v4, 0.0 }
  0x5d   : > { %v915_v54 = vpop.eup %914  ;;  %926 = vlog2.f32 %v360_v11  ;;  %v409_v42 = vmul.f32 %v913_v44, %v899_v22  ;;  %v420_v11 = vsel %vm388_vm1, %v903_v9, %v404_v10  ;;  %vm395_vm9 = vcmp.ge.f32.partialorder %v1161_v5, 0.0  ;;  %v1648_v10 = vld [vmem:[#allocation29_spill] sm:$0xff] }
  0x5e   : > { %v917_v33 = vpop.eup %916  ;;  %v483_v7 = vmul.f32 0.6931472, %v915_v54  ;;  %928 = vlog2.f32 %v361_v49  ;;  %v421_v0 = vsel %vm389_vm2, %v905_v19, %v405_v55  ;;  %v1412_v35 = vsel %vm390_vm3, %v907_v13, %v406_v30  ;;  %v1646_v13 = vld [vmem:[#allocation37_spill] sm:$0xff]  ;;  %v1649_v54 = vld [vmem:[#allocation22_spill] sm:$0xff] }
  0x5f   : > { %v919_v41 = vpop.eup %918  ;;  %v485_v43 = vmul.f32 0.6931472, %v917_v33  ;;  %930 = vrcp.f32 %v1362_v28  ;;  %v1416_v9 = vsel %vm391_vm4, %v909_v15, %v407_v38  ;;  %v549_v39 = vmul.f32 %v419_v32, %v1297_v58  ;;  %v1650_v38 = vld [vmem:[#allocation30_spill] sm:$0xff] }
  0x60   : > { %v921_v27 = vpop.eup %920  ;;  %v487_v37 = vmul.f32 0.6931472, %v919_v41  ;;  %v514_v61 = vadd.f32 %v483_v7, %v466_v8  ;;  %v1421_v8 = vsel %vm392_vm6, %v911_v60, %v408_v23  ;;  %v1424_v19 = vmul.f32 %v420_v11, %v1308_v29  ;;  %v1647_v60 = vld [vmem:[#allocation21_spill] sm:$0xff]  ;;  %v1651_v7 = vld [vmem:[#allocation23_spill] sm:$0xff]  ;;  %v1653_v41 = vld [vmem:[#allocation8_spill] sm:$0xff] }
  0x61   : > { %v923_v45 = vpop.eup %922  ;;  %v489_v28 = vmul.f32 0.6931472, %v921_v27  ;;  %v515_v14 = vadd.f32 %v485_v43, %v467_v24  ;;  %v1428_v48 = vsel %vm393_vm7, %v913_v44, %v409_v42  ;;  %v1431_v53 = vmul.f32 %v421_v0, %v1317_v36  ;;  %v1652_v23 = vld [vmem:[#allocation31_spill] sm:$0xff]  ;;  %v1654_v43 = vld [vmem:[#allocation9_spill] sm:$0xff] }
  0x62   : > { %v925_v12 = vpop.eup %924  ;;  %v491_v16 = vmul.f32 0.6931472, %v923_v45  ;;  %v516_v56 = vadd.f32 %v487_v37, %v468_v62  ;;  %v1435_v50 = vmul.f32 %v1412_v35, %v1323_v26  ;;  %v1439_v62 = vmul.f32 %v1416_v9, %v1325_v52  ;;  %v1657_v45 = vld [vmem:[#allocation32_spill] sm:$0xff] }
  0x63   : > { %v927_v40 = vpop.eup %926  ;;  %v493_v47 = vmul.f32 0.6931472, %v925_v12  ;;  %v517_v17 = vadd.f32 %v489_v28, %v469_v3  ;;  %v530_v24 = vadd.f32 %v515_v14, %v514_v61  ;;  %v1443_v3 = vmul.f32 %v1421_v8, %v1333_v1  ;;  %v1656_v61 = vld [vmem:[#allocation24_spill] sm:$0xff] }
  0x64   : > { %v929_v15 = vpop.eup %928  ;;  %v495_v51 = vmul.f32 0.6931472, %v927_v40  ;;  %v518_v49 = vadd.f32 %v491_v16, %v1382_v57  ;;  %vm396_vm10 = vcmp.ge.f32.partialorder %v1163_v6, 0.0  ;;  %v410_v25 = vmul.f32 %v1646_v13, %v1219_v59  ;;  %v1655_v59 = vld [vmem:[#allocation10_spill] sm:$0xff]  ;;  %v1659_v40 = vld [vmem:[#allocation11_spill] sm:$0xff] }
  0x65   : > { %v931_v22 = vpop.eup %930  ;;  %v497_v2 = vmul.f32 0.6931472, %v929_v15  ;;  %v531_v46 = vadd.f32 %v530_v24, %v516_v56  ;;  %v411_v44 = vmul.f32 %v1648_v10, %v1647_v60  ;;  %v519_v55 = vadd.f32 %v493_v47, %v1384_v18  ;;  %v1660_v47 = vld [vmem:[#allocation25_spill] sm:$0xff]  ;;  %v1665_v6 = vld [vmem:[#allocation15_spill] sm:$0xff] }
  0x66   : > { %v402_v21 = vmul.f32 %v931_v22, %v1341_v31  ;;  %v412_v33 = vmul.f32 %v1650_v38, %v1649_v54  ;;  %v413_v57 = vmul.f32 %v1652_v23, %v1651_v7  ;;  %vm397_vm11 = vcmp.ge.f32.partialorder %v1653_v41, 0.0  ;;  %v1662_v24 = vld [vmem:[#allocation13_spill] sm:$0xff]  ;;  %v1669_v60 = vld [vmem:[#allocation35_spill] sm:$0xff] }
  0x67   : > { %v532_v30 = vadd.f32 %v531_v46, %v517_v17  ;;  %vm398_vm12 = vcmp.ge.f32.partialorder %v1654_v43, 0.0  ;;  %vm399_vm13 = vcmp.ge.f32.partialorder %v1655_v59, 0.0  ;;  %v520_v42 = vadd.f32 %v495_v51, %v1386_v63  ;;  %v1661_v17 = vld [vmem:[#allocation33_spill] sm:$0xff] }
  0x68   : > { %v418_v31 = vsel %vm386_vm5, %v931_v22, %v402_v21  ;;  %v521_v18 = vadd.f32 %v497_v2, %v1388_v20  ;;  %v414_v28 = vmul.f32 %v1657_v45, %v1656_v61  ;;  %v426_v34 = vsel %vm394_vm8, %v1646_v13, %v410_v25  ;;  %v1658_v20 = vld [vmem:[#allocation28_spill] sm:$0xff]  ;;  %v1663_v22 = vld [vmem:[#allocation14_spill] sm:$0xff]  ;;  %v1668_v25 = vld [vmem:[#allocation27_spill] sm:$0xff] }
  0x69   : > { %v533_v27 = vadd.f32 %v532_v30, %v518_v49  ;;  %v582_v37 = vadd.f32 %v419_v32, %v418_v31  ;;  %v427_v14 = vsel %vm395_vm9, %v1648_v10, %v411_v44  ;;  %v428_v12 = vsel %vm396_vm10, %v1650_v38, %v412_v33  ;;  %v1664_v49 = vld [vmem:[#allocation12_spill] sm:$0xff]  ;;  %v1667_v21 = vld [vmem:[#allocation34_spill] sm:$0xff]  ;;  %v1671_v43 = vld [vmem:[#allocation17_spill] sm:$0xff] }
  0x6a   : > { %v548_v56 = vmul.f32 %v418_v31, %v1658_v20  ;;  %v429_v32 = vsel %vm397_vm11, %v1652_v23, %v413_v57  ;;  %vm400_vm14 = vcmp.ge.f32.partialorder %v1659_v40, 0.0  ;;  %v415_v4 = vmul.f32 %v1661_v17, %v1660_v47  ;;  %v1674_v47 = vld [vmem:[#allocation36_spill] sm:$0xff] }
  0x6b   : > { %v534_v63 = vadd.f32 %v533_v27, %v519_v55  ;;  %v583_v16 = vadd.f32 %v582_v37, %v420_v11  ;;  %v556_v15 = vmul.f32 %v426_v34, %v1662_v24  ;;  %v557_v5 = vmul.f32 %v427_v14, %v1663_v22  ;;  %v1666_v11 = vld [vmem:[#allocation26_spill] sm:$0xff]  ;;  %v1670_v55 = vld [vmem:[#allocation16_spill] sm:$0xff] }
  0x6c   : > { %vm401_vm15 = vcmp.ge.f32.partialorder %v1664_v49, 0.0  ;;  %v558_v46 = vmul.f32 %v428_v12, %v1665_v6  ;;  %v416_v13 = vmul.f32 %v1667_v21, %v1666_v11  ;;  %v417_v10 = vmul.f32 %v1669_v60, %v1668_v25 }
  0x6d   : > { %v535_v51 = vadd.f32 %v534_v63, %v520_v42  ;;  %v584_v2 = vadd.f32 %v583_v16, %v421_v0  ;;  %v430_v44 = vsel %vm398_vm12, %v1657_v45, %v414_v28  ;;  %v559_v30 = vmul.f32 %v429_v32, %v1670_v55  ;;  %v1673_v16 = vld [vmem:[#allocation19_spill] sm:$0xff] }
  0x6e   : > { %v573_v0 = vadd.f32 %v557_v5, %v556_v15  ;;  %v564_v33 = vadd.f32 %v549_v39, %v548_v56  ;;  %v431_v7 = vsel %vm399_vm13, %v1661_v17, %v415_v4  ;;  %v591_v23 = vadd.f32 %v427_v14, %v426_v34 }
  0x6f   : > { %v536_v54 = vadd.f32 %v535_v51, %v521_v18  ;;  %v585_v38 = vadd.f32 %v584_v2, %v1412_v35  ;;  %v609_v57 = vadd.f32 %v1663_v22, %v1662_v24  ;;  %v600_v31 = vadd.f32 %v1297_v58, %v1658_v20  ;;  %v1672_v58 = vld [vmem:[#allocation18_spill] sm:$0xff] }
  0x70   : > { %v560_v42 = vmul.f32 %v430_v44, %v1671_v43  ;;  %v574_v18 = vadd.f32 %v573_v0, %v558_v46  ;;  %v565_v35 = vadd.f32 %v564_v33, %v1424_v19  ;;  %v432_v39 = vsel %vm400_vm14, %v1667_v21, %v416_v13 }
  0x71   : > { %537 = vadd.xlane.f32.xlu0 %v536_v54  ;;  %v586_v41 = vadd.f32 %v585_v38, %v1416_v9  ;;  %v592_v59 = vadd.f32 %v591_v23, %v428_v12  ;;  %v610_v27 = vadd.f32 %v609_v57, %v1665_v6  ;;  %v601_v37 = vadd.f32 %v600_v31, %v1308_v29 }
  0x72   : > { %v561_v45 = vmul.f32 %v431_v7, %v1672_v58  ;;  %v575_v28 = vadd.f32 %v574_v18, %v559_v30  ;;  %v566_v9 = vadd.f32 %v565_v35, %v1431_v53  ;;  %v433_v19 = vsel %vm401_vm15, %v1669_v60, %v417_v10 }
  0x73   : > { %v587_v61 = vadd.f32 %v586_v41, %v1421_v8  ;;  %v593_v34 = vadd.f32 %v592_v59, %v429_v32  ;;  %v611_v14 = vadd.f32 %v610_v27, %v1670_v55  ;;  %v602_v12 = vadd.f32 %v601_v37, %v1317_v36  ;;  %v1675_v32 = vld [vmem:[#allocation20_spill] sm:$0xff] }
  0x74   : > { %v562_v29 = vmul.f32 %v432_v39, %v1673_v16  ;;  %v576_v20 = vadd.f32 %v575_v28, %v560_v42  ;;  %v567_v8 = vadd.f32 %v566_v9, %v1435_v50  ;;  %v555_v17 = vmul.f32 %v1428_v48, %v1674_v47 }
  0x75   : > { %v588_v63 = vadd.f32 %v587_v61, %v1428_v48  ;;  %v594_v56 = vadd.f32 %v593_v34, %v430_v44  ;;  %v612_v40 = vadd.f32 %v611_v14, %v1671_v43  ;;  %v603_v53 = vadd.f32 %v602_v12, %v1323_v26 }
  0x76   : > { %v563_v4 = vmul.f32 %v433_v19, %v1675_v32  ;;  %v577_v24 = vadd.f32 %v576_v20, %v561_v45  ;;  %v568_v36 = vadd.f32 %v567_v8, %v1439_v62  ;;  %vm239_vm0 = vcmask 31744  }
  0x77   : > { %589 = vadd.xlane.f32.xlu2 %v588_v63  ;;  %v595_v15 = vadd.f32 %v594_v56, %v431_v7  ;;  %v613_v50 = vadd.f32 %v612_v40, %v1672_v58  ;;  %v604_v51 = vadd.f32 %v603_v53, %v1325_v52  ;;  %v1050_v52 = vmov 0.0  }
  0x78   : > { %v578_v22 = vadd.f32 %v577_v24, %v562_v29  ;;  %v569_v5 = vadd.f32 %v568_v36, %v1443_v3  ;;  %240 = vst.msk [vmem:[%s1536_s3] sm:$0xff] %vm239_vm0, %v1050_v52  ;;  %v618_v21 = vlaneseq }
  0x79   : > { %v596_v2 = vadd.f32 %v595_v15, %v432_v39  ;;  %v614_v48 = vadd.f32 %v613_v50, %v1673_v16  ;;  %v605_v46 = vadd.f32 %v604_v51, %v1333_v1  ;;  %241 = vst.msk [vmem:[%s1536_s3 + $0x8] sm:$0xff] %vm239_vm0, %v1050_v52 }
  0x7a   : > { %v579_v26 = vadd.f32 %v578_v22, %v563_v4  ;;  %v570_v49 = vadd.f32 %v569_v5, %v555_v17  ;;  %v619_v25 = vand.u32 127, %v618_v21 }
  0x7b   : > { %v597_v6 = vadd.f32 %v596_v2, %v433_v19  ;;  %v615_v62 = vadd.f32 %v614_v48, %v1675_v32  ;;  %v606_v3 = vadd.f32 %v605_v46, %v1674_v47 }
  0x7c   : > { %580 = vadd.xlane.f32.xlu1 %v579_v26  ;;  %571 = vadd.xlane.f32.xlu0 %v570_v49  ;;  %vm623_vm1 = vcmp.eq.s32.totalorder %v619_v25, 1  ;;  %vm620_vm2 = vcmp.eq.s32.totalorder %v619_v25, 0  ;;  %vm628_vm3 = vcmp.eq.s32.totalorder %v619_v25, 2  ;;  %vm633_vm4 = vcmp.eq.s32.totalorder %v619_v25, 3 }
  0x7f   : > { %598 = vadd.xlane.f32.xlu2 %v597_v6  ;;  %v638_v39 = vld [vmem:[%s1536_s3] sm:$0xff] }
  0x80   : > { %v639_v18 = vld [vmem:[%s1536_s3 + $0x8] sm:$0xff] }
  0x84   : > { %616 = vadd.xlane.f32.xlu1 %v615_v62  ;;  %607 = vadd.xlane.f32.xlu0 %v606_v3 }
  0xca   : > { %v547_v1 = vpop.xlane.xlu1 %546 }
  0xcb   : > { %v622_v54 = vsel %vm620_vm2, %v547_v1, 0.0 }
  0xe4   : > { %v538_v11 = vpop.xlane.xlu0 %537 }
  0xe5   : > { %v621_v38 = vsel %vm620_vm2, %v538_v11, 0.0 }
  0xea   : > { %v590_v13 = vpop.xlane.xlu2 %589 }
  0xeb   : > { %v629_v23 = vsel %vm628_vm3, %v590_v13, 0.0 }
  0xef   : > { %v581_v60 = vpop.xlane.xlu1 %580  ;;  %v572_v10 = vpop.xlane.xlu0 %571 }
  0xf0   : > { %v625_v44 = vsel %vm623_vm1, %v581_v60, 0.0  ;;  %v624_v55 = vsel %vm623_vm1, %v572_v10, 0.0 }
  0xf1   : > { %v627_v0 = vadd.f32 %v625_v44, %v622_v54  ;;  %v626_v33 = vadd.f32 %v624_v55, %v621_v38 }
  0xf2   : > { %v599_v30 = vpop.xlane.xlu2 %598 }
  0xf3   : > { %v630_v7 = vsel %vm628_vm3, %v599_v30, 0.0  ;;  %v631_v41 = vadd.f32 %v629_v23, %v626_v33 }
  0xf4   : > { %v632_v57 = vadd.f32 %v630_v7, %v627_v0 }
  0xf7   : > { %v617_v31 = vpop.xlane.xlu1 %616  ;;  %v608_v43 = vpop.xlane.xlu0 %607 }
  0xf8   : > { %v635_v42 = vsel %vm633_vm4, %v617_v31, 0.0  ;;  %v634_v35 = vsel %vm633_vm4, %v608_v43, 0.0 }
  0xf9   : > { %v637_v59 = vadd.f32 %v635_v42, %v632_v57  ;;  %v636_v27 = vadd.f32 %v634_v35, %v631_v41 }
  0xfb   : > { %v641_v37 = vadd.f32 %v639_v18, %v637_v59  ;;  %v640_v61 = vadd.f32 %v638_v39, %v636_v27 }
  0xfd   : > { %643 = vst.msk [vmem:[%s1536_s3] sm:$0xff] %vm239_vm0, %v640_v61 }
  0xfe   : > { %644 = vst.msk [vmem:[%s1536_s3 + $0x8] sm:$0xff] %vm239_vm0, %v641_v37 }
  0xff PF: > { %s18_s14 = sadd.s32 1, %s1046_s14   ;;  %s1676_s9 = smov %s1030_s10 }
 0x100   : > { %p15_p0 = scmp.ge.s32.totalorder %s18_s14, 4   ;;  %s1677_s10 = smov %s1034_s11 }
 0x101   : > { %s1678_s11 = smov %s1115_s21  ;;  %s1679_s12 = smov %s1042_s13 }
 0x102   : > { %s1680_s13 = smov %s1682_s16  ;;  %17 = sbr.rel (!%p15_p0) target bundleno = 6 (0x6), region = 85 }
 0x107   :  { %667 = vsyncpa [#allocation3], 1 }
 0x108   :  { %669 = vsyncpa [#allocation3 + $0x1], 1 }
 0x109   :  { %670 = vsyncpa [#allocation5], 1 }
 0x10a   :  { %672 = vsyncpa [#allocation5 + $0x1], 1 }

</bundles_post_ra>
